<compile_context>
chip_gen: v6e
topology: v6e:2x2x1
jax: 0.10.0
libtpu: 0.0.40
codegen_flags: <defaults>
</compile_context>

<pallas_src>
import functools

import jax
import jax.numpy as jnp
from jax.experimental import pallas as pl
from jax.experimental.pallas import tpu as pltpu

_HIGH = jax.lax.Precision.HIGHEST


def _qmix_forward_kernel(x_ref, h_ref, w1_ref, b1_ref, wih_ref, whh_ref,
                         bih_ref, bhh_ref, w2_ref, b2_ref, q_ref, hn_ref):
    """Whole QMIXAgent_net forward: fused fc1 projection + GRU + fc2.

    x_ref  : (B*T, I)   observations, batch-major rows (row = b*T + t)
    h_ref  : (1, B, H)  initial hidden state
    w1/b1  : (I, 64), (1, 64)          fc1
    wih/whh: (64, 3H), (H, 3H)         GRU weights, gate order [r | z | n]
    bih/bhh: (1, 3H), (1, 3H)          GRU biases
    w2/b2  : (H, A), (1, A)            fc2
    q_ref  : (B*T, A)   q-values, batch-major rows (row = b*T + t)
    hn_ref : (1, B, H)  final hidden state
    """
    B = h_ref.shape[1]
    H = h_ref.shape[2]
    T = x_ref.shape[0] // B
    f32 = jnp.float32

    # ---- fc1 fused into the GRU input projection (exact: no activation):
    #      fc1(x) @ W_ih + b_ih == x @ (W1 @ W_ih) + (b1 @ W_ih + b_ih).
    wih = wih_ref[...]
    w_fused = jnp.dot(w1_ref[...], wih, preferred_element_type=f32)      # (I, 3H)
    b_fused = (jnp.dot(b1_ref[...], wih, preferred_element_type=f32)
               + bih_ref[...])                                           # (1, 3H)
    # Fold the r/z recurrent biases into the input side (both are added
    # before their sigmoid); only the n-gate recurrent bias stays inside the
    # recurrence because it is scaled by r.
    bhh = bhh_ref[...]                                                   # (1, 3H)
    gate_lane = jax.lax.broadcasted_iota(jnp.int32, (1, 3 * H), 1)
    b_fused = b_fused + jnp.where(gate_lane < 2 * H, bhh, 0.0)

    # ---- Time-major input rows via static sublane gathers (off the critical
    #      path), so each step's gate input is one contiguous (B, 3H) slice.
    x = x_ref[...]                                                       # (B*T, I)
    x_tm = jnp.concatenate(
        [x[b * T + t:b * T + t + 1, :] for t in range(T) for b in range(B)],
        axis=0)                                                          # (T*B, I)

    # ---- ONE MXU matmul for the input projection of all T*B rows, emitted
    #      as a single lane-dense (T*B, 3H) slab.
    gi = jnp.dot(x_tm, w_fused, preferred_element_type=f32) + b_fused    # (T*B, 3H)

    # ---- Recurrence.  W_hh in native (H, 3H) layout; recurrent term for all
    #      three gates with ONE broadcast-multiply + sublane reduce (VPU/XLU).
    whh_b = whh_ref[...][None, :, :]                                     # (1, H, 3H)
    bhh_n = jnp.broadcast_to(bhh[:, 2 * H:], (B, H))                     # (B, H)

    h = h_ref[0]                                                         # (B, H), in vregs
    hs = []
    # Full unroll (T is small for QMIX episodes); for long episodes use
    # lax.fori_loop(0, T, step, h0, unroll=4..8) with a VMEM carry instead.
    for t in range(T):
        gh = jnp.sum(h[:, :, None] * whh_b, axis=1)                      # (B, 3H)
        gi_t = gi[t * B:(t + 1) * B, :]                                  # (B, 3H)
        # One sigmoid over the joint r|z 2H-lane region.
        rz = jax.nn.sigmoid(gi_t[:, :2 * H] + gh[:, :2 * H])             # (B, 2H)
        r = rz[:, :H]
        z = rz[:, H:]
        n = jnp.tanh(gi_t[:, 2 * H:] + r * (gh[:, 2 * H:] + bhh_n))      # (B, H)
        h = (1.0 - z) * n + z * h
        hs.append(h)

    # ---- Deferred fc2 over all hidden states, assembled batch-major so the
    #      q output is a single lane-contiguous 2-D block (row = b*T + t);
    #      the wrapper reshape to (B, T, A) is a free row-major view.
    h_all = jnp.concatenate(
        [hs[t][b:b + 1, :] for b in range(B) for t in range(T)], axis=0)  # (B*T, H)
    q_ref[...] = (jnp.dot(h_all, w2_ref[...], preferred_element_type=f32)
                  + b2_ref[...])                                         # (B*T, A)
    hn_ref[0] = h                                                        # (B, H)


@functools.partial(jax.jit, static_argnums=3)
def qmix_agent_forward(inputs, hidden_s, params, max_step):
    """inputs: (B*T, input_size) f32, hidden_s: (1, B, hidden_size) f32.

    Returns (q_val: (B, T, action_size), hidden_next: (1, B, hidden_size)).
    """
    w1, b1, wih, whh, bih, bhh, w2, b2 = params
    H = whh.shape[0]
    A = w2.shape[1]
    T = max_step
    B = inputs.shape[0] // T

    def vmem():
        return pl.BlockSpec(memory_space=pltpu.MemorySpace.VMEM)

    # Single launch, no grid: every operand is fully resident in VMEM
    # (~100 KiB total at these shapes, far below the scoped limit).
    q_flat, hidden_next = pl.pallas_call(
        _qmix_forward_kernel,
        out_shape=(jax.ShapeDtypeStruct((B * T, A), jnp.float32),
                   jax.ShapeDtypeStruct((1, B, H), jnp.float32)),
        in_specs=[vmem() for _ in range(10)],
        out_specs=(vmem(), vmem()),
    )(inputs, hidden_s, w1, b1, wih, whh, bih, bhh, w2, b2)

    # (B*T, A) batch-major -> (B, T, A): metadata-only reshape, no data move.
    return q_flat.reshape(B, T, A), hidden_next


def _reference_forward(inputs, hidden_s, params, max_step):
    """Pure-JAX reference matching torch semantics, for sanity checking."""
    w1, b1, wih, whh, bih, bhh, w2, b2 = params
    H = whh.shape[0]
    T = max_step
    B = inputs.shape[0] // T

    fc1 = jnp.dot(inputs, w1, precision=_HIGH) + b1[0]
    fc1 = fc1.reshape(B, T, 64)
    h = hidden_s[0]
    qs = []
    for t in range(T):
        x_t = fc1[:, t, :]
        gi = jnp.dot(x_t, wih, precision=_HIGH) + bih[0]
        gh = jnp.dot(h, whh, precision=_HIGH) + bhh[0]
        r = jax.nn.sigmoid(gi[:, :H] + gh[:, :H])
        z = jax.nn.sigmoid(gi[:, H:2 * H] + gh[:, H:2 * H])
        n = jnp.tanh(gi[:, 2 * H:] + r * gh[:, 2 * H:])
        h = (1.0 - z) * n + z * h
        qs.append(jnp.dot(h, w2, precision=_HIGH) + b2[0])
    q = jnp.stack(qs, axis=1)
    return q, h[None]


def make_params(key, input_size, hidden_size, action_size):
    ks = jax.random.split(key, 8)

    def u(k, shape, fan_in):
        bound = 1.0 / jnp.sqrt(fan_in)
        return jax.random.uniform(k, shape, jnp.float32, -bound, bound)

    # Stored transposed relative to torch (in_features, out_features) so the
    # forward does x @ W directly.  GRU gate order matches torch: [r, z, n].
    w1 = u(ks[0], (input_size, 64), input_size)
    b1 = u(ks[1], (1, 64), input_size)
    wih = u(ks[2], (64, 3 * hidden_size), hidden_size)
    whh = u(ks[3], (hidden_size, 3 * hidden_size), hidden_size)
    bih = u(ks[4], (1, 3 * hidden_size), hidden_size)
    bhh = u(ks[5], (1, 3 * hidden_size), hidden_size)
    w2 = u(ks[6], (hidden_size, action_size), hidden_size)
    b2 = u(ks[7], (1, action_size), hidden_size)
    return (w1, b1, wih, whh, bih, bhh, w2, b2)


if __name__ == "__main__":
    input_size, hidden_size, action_size = 16, 32, 8
    B, max_step = 2, 4

    key = jax.random.PRNGKey(0)
    k_par, k_x, k_h = jax.random.split(key, 3)
    params = make_params(k_par, input_size, hidden_size, action_size)

    inputs = jax.random.normal(k_x, (B * max_step, input_size), jnp.float32)
    hidden_s = jax.random.normal(k_h, (1, B, hidden_size), jnp.float32)

    q_val, h_next = qmix_agent_forward(inputs, hidden_s, params, max_step)
    jax.block_until_ready((q_val, h_next))

    q_ref, h_ref = _reference_forward(inputs, hidden_s, params, max_step)
    assert q_val.shape == (B, max_step, action_size)
    assert h_next.shape == (1, B, hidden_size)
    # Tolerance covers the MXU's default contraction precision for f32
    # operands on the three small in-kernel matmuls; all recurrence math is
    # exact f32 on the VPU/XLU, so any semantic error (gate order, bias
    # placement, time/batch layout) would be orders of magnitude larger.
    assert jnp.allclose(q_val, q_ref, atol=5e-3, rtol=5e-3)
    assert jnp.allclose(h_next, h_ref, atol=5e-3, rtol=5e-3)

    print("KERNEL_OK")
</pallas_src>

<mosaic_0001>
module attributes {stable_mosaic.version = 11 : i64} {
  func.func @_qmix_forward_kernel(%arg0: memref<8x16xf32, #tpu.memory_space<vmem>>, %arg1: memref<1x2x32xf32, #tpu.memory_space<vmem>>, %arg2: memref<16x64xf32, #tpu.memory_space<vmem>>, %arg3: memref<1x64xf32, #tpu.memory_space<vmem>>, %arg4: memref<64x96xf32, #tpu.memory_space<vmem>>, %arg5: memref<32x96xf32, #tpu.memory_space<vmem>>, %arg6: memref<1x96xf32, #tpu.memory_space<vmem>>, %arg7: memref<1x96xf32, #tpu.memory_space<vmem>>, %arg8: memref<32x8xf32, #tpu.memory_space<vmem>>, %arg9: memref<1x8xf32, #tpu.memory_space<vmem>>, %arg10: memref<8x8xf32, #tpu.memory_space<vmem>>, %arg11: memref<1x2x32xf32, #tpu.memory_space<vmem>>) attributes {dimension_semantics = [], scalar_prefetch = 0 : i64, scratch_operands = 0 : i64, tpu.core_type = #tpu.core_type<tc>} {
    %c0 = arith.constant 0 : index
    %c0_0 = arith.constant 0 : index
    %0 = vector.load %arg4[%c0, %c0_0] : memref<64x96xf32, #tpu.memory_space<vmem>>, vector<64x96xf32>
    %c0_1 = arith.constant 0 : index
    %c0_2 = arith.constant 0 : index
    %1 = vector.load %arg2[%c0_1, %c0_2] : memref<16x64xf32, #tpu.memory_space<vmem>>, vector<16x64xf32>
    %cst = arith.constant dense<0.000000e+00> : vector<16x96xf32>
    %2 = tpu.matmul %1, %0, %cst {dimension_numbers = #tpu.dot_dimension_numbers<[1], [0], [0], [1], [0, 0, 1, 1], [], []>} : vector<16x64xf32>, vector<64x96xf32>, vector<16x96xf32> -> vector<16x96xf32>
    %c0_3 = arith.constant 0 : index
    %c0_4 = arith.constant 0 : index
    %3 = vector.load %arg3[%c0_3, %c0_4] : memref<1x64xf32, #tpu.memory_space<vmem>>, vector<1x64xf32>
    %cst_5 = arith.constant dense<0.000000e+00> : vector<1x96xf32>
    %4 = tpu.matmul %3, %0, %cst_5 {dimension_numbers = #tpu.dot_dimension_numbers<[1], [0], [0], [1], [0, 0, 1, 1], [], []>} : vector<1x64xf32>, vector<64x96xf32>, vector<1x96xf32> -> vector<1x96xf32>
    %c0_6 = arith.constant 0 : index
    %c0_7 = arith.constant 0 : index
    %5 = vector.load %arg6[%c0_6, %c0_7] : memref<1x96xf32, #tpu.memory_space<vmem>>, vector<1x96xf32>
    %6 = arith.addf %4, %5 : vector<1x96xf32>
    %c0_8 = arith.constant 0 : index
    %c0_9 = arith.constant 0 : index
    %7 = vector.load %arg7[%c0_8, %c0_9] : memref<1x96xf32, #tpu.memory_space<vmem>>, vector<1x96xf32>
    %8 = tpu.iota {dimensions = array<i32: 1>} : vector<1x96xi32>
    %c64_i32 = arith.constant 64 : i32
    %9 = vector.broadcast %c64_i32 : i32 to vector<1x96xi32>
    %10 = arith.cmpi slt, %8, %9 : vector<1x96xi32>
    %cst_10 = arith.constant 0.000000e+00 : f32
    %11 = vector.broadcast %cst_10 : f32 to vector<1x96xf32>
    %12 = arith.select %10, %7, %11 : vector<1x96xi1>, vector<1x96xf32>
    %13 = arith.addf %6, %12 : vector<1x96xf32>
    %c0_11 = arith.constant 0 : index
    %c0_12 = arith.constant 0 : index
    %14 = vector.load %arg0[%c0_11, %c0_12] : memref<8x16xf32, #tpu.memory_space<vmem>>, vector<8x16xf32>
    %15 = vector.extract_strided_slice %14 {offsets = [0, 0], sizes = [1, 16], strides = [1, 1]} : vector<8x16xf32> to vector<1x16xf32>
    %16 = vector.extract_strided_slice %14 {offsets = [4, 0], sizes = [1, 16], strides = [1, 1]} : vector<8x16xf32> to vector<1x16xf32>
    %17 = vector.extract_strided_slice %14 {offsets = [1, 0], sizes = [1, 16], strides = [1, 1]} : vector<8x16xf32> to vector<1x16xf32>
    %18 = vector.extract_strided_slice %14 {offsets = [5, 0], sizes = [1, 16], strides = [1, 1]} : vector<8x16xf32> to vector<1x16xf32>
    %19 = vector.extract_strided_slice %14 {offsets = [2, 0], sizes = [1, 16], strides = [1, 1]} : vector<8x16xf32> to vector<1x16xf32>
    %20 = vector.extract_strided_slice %14 {offsets = [6, 0], sizes = [1, 16], strides = [1, 1]} : vector<8x16xf32> to vector<1x16xf32>
    %21 = vector.extract_strided_slice %14 {offsets = [3, 0], sizes = [1, 16], strides = [1, 1]} : vector<8x16xf32> to vector<1x16xf32>
    %22 = vector.extract_strided_slice %14 {offsets = [7, 0], sizes = [1, 16], strides = [1, 1]} : vector<8x16xf32> to vector<1x16xf32>
    %23 = tpu.concatenate %15, %16, %17, %18, %19, %20, %21, %22 in 0 : vector<1x16xf32>, vector<1x16xf32>, vector<1x16xf32>, vector<1x16xf32>, vector<1x16xf32>, vector<1x16xf32>, vector<1x16xf32>, vector<1x16xf32> -> vector<8x16xf32>
    %cst_13 = arith.constant dense<0.000000e+00> : vector<8x96xf32>
    %24 = tpu.matmul %23, %2, %cst_13 {dimension_numbers = #tpu.dot_dimension_numbers<[1], [0], [0], [1], [0, 0, 1, 1], [], []>} : vector<8x16xf32>, vector<16x96xf32>, vector<8x96xf32> -> vector<8x96xf32>
    %25 = vector.broadcast %13 : vector<1x96xf32> to vector<8x96xf32>
    %26 = arith.addf %24, %25 : vector<8x96xf32>
    %c0_14 = arith.constant 0 : index
    %c0_15 = arith.constant 0 : index
    %27 = vector.load %arg5[%c0_14, %c0_15] : memref<32x96xf32, #tpu.memory_space<vmem>>, vector<32x96xf32>
    %28 = vector.shape_cast %27 : vector<32x96xf32> to vector<1x32x96xf32>
    %29 = vector.extract_strided_slice %7 {offsets = [0, 64], sizes = [1, 32], strides = [1, 1]} : vector<1x96xf32> to vector<1x32xf32>
    %30 = vector.shape_cast %29 : vector<1x32xf32> to vector<1x32xf32>
    %31 = vector.broadcast %30 : vector<1x32xf32> to vector<2x32xf32>
    %c0_16 = arith.constant 0 : index
    %c0_17 = arith.constant 0 : index
    %c0_18 = arith.constant 0 : index
    %32 = vector.load %arg1[%c0_16, %c0_17, %c0_18] : memref<1x2x32xf32, #tpu.memory_space<vmem>>, vector<1x2x32xf32>
    %33 = vector.shape_cast %32 : vector<1x2x32xf32> to vector<2x32xf32>
    %34 = vector.shape_cast %33 : vector<2x32xf32> to vector<2x32x1xf32>
    %35 = vector.broadcast %34 : vector<2x32x1xf32> to vector<2x32x96xf32>
    %36 = vector.broadcast %28 : vector<1x32x96xf32> to vector<2x32x96xf32>
    %37 = arith.mulf %35, %36 : vector<2x32x96xf32>
    %cst_19 = arith.constant dense<0.000000e+00> : vector<2x96xf32>
    %38 = vector.multi_reduction <add>, %37, %cst_19 [1] : vector<2x32x96xf32> to vector<2x96xf32>
    %39 = vector.extract_strided_slice %26 {offsets = [0, 0], sizes = [2, 96], strides = [1, 1]} : vector<8x96xf32> to vector<2x96xf32>
    %40 = vector.extract_strided_slice %39 {offsets = [0, 0], sizes = [2, 64], strides = [1, 1]} : vector<2x96xf32> to vector<2x64xf32>
    %41 = vector.extract_strided_slice %38 {offsets = [0, 0], sizes = [2, 64], strides = [1, 1]} : vector<2x96xf32> to vector<2x64xf32>
    %42 = arith.addf %40, %41 : vector<2x64xf32>
    %43 = arith.negf %42 : vector<2x64xf32>
    %44 = math.exp %43 : vector<2x64xf32>
    %cst_20 = arith.constant 1.000000e+00 : f32
    %45 = vector.broadcast %cst_20 : f32 to vector<2x64xf32>
    %46 = arith.addf %45, %44 : vector<2x64xf32>
    %47 = arith.divf %45, %46 : vector<2x64xf32>
    %48 = vector.extract_strided_slice %47 {offsets = [0, 0], sizes = [2, 32], strides = [1, 1]} : vector<2x64xf32> to vector<2x32xf32>
    %49 = vector.extract_strided_slice %47 {offsets = [0, 32], sizes = [2, 32], strides = [1, 1]} : vector<2x64xf32> to vector<2x32xf32>
    %50 = vector.extract_strided_slice %39 {offsets = [0, 64], sizes = [2, 32], strides = [1, 1]} : vector<2x96xf32> to vector<2x32xf32>
    %51 = vector.extract_strided_slice %38 {offsets = [0, 64], sizes = [2, 32], strides = [1, 1]} : vector<2x96xf32> to vector<2x32xf32>
    %52 = arith.addf %51, %31 : vector<2x32xf32>
    %53 = arith.mulf %48, %52 : vector<2x32xf32>
    %54 = arith.addf %50, %53 : vector<2x32xf32>
    %55 = math.tanh %54 : vector<2x32xf32>
    %cst_21 = arith.constant 1.000000e+00 : f32
    %56 = vector.broadcast %cst_21 : f32 to vector<2x32xf32>
    %57 = arith.subf %56, %49 : vector<2x32xf32>
    %58 = arith.mulf %57, %55 : vector<2x32xf32>
    %59 = arith.mulf %49, %33 : vector<2x32xf32>
    %60 = arith.addf %58, %59 : vector<2x32xf32>
    %61 = vector.shape_cast %60 : vector<2x32xf32> to vector<2x32x1xf32>
    %62 = vector.broadcast %61 : vector<2x32x1xf32> to vector<2x32x96xf32>
    %63 = vector.broadcast %28 : vector<1x32x96xf32> to vector<2x32x96xf32>
    %64 = arith.mulf %62, %63 : vector<2x32x96xf32>
    %cst_22 = arith.constant dense<0.000000e+00> : vector<2x96xf32>
    %65 = vector.multi_reduction <add>, %64, %cst_22 [1] : vector<2x32x96xf32> to vector<2x96xf32>
    %66 = vector.extract_strided_slice %26 {offsets = [2, 0], sizes = [2, 96], strides = [1, 1]} : vector<8x96xf32> to vector<2x96xf32>
    %67 = vector.extract_strided_slice %66 {offsets = [0, 0], sizes = [2, 64], strides = [1, 1]} : vector<2x96xf32> to vector<2x64xf32>
    %68 = vector.extract_strided_slice %65 {offsets = [0, 0], sizes = [2, 64], strides = [1, 1]} : vector<2x96xf32> to vector<2x64xf32>
    %69 = arith.addf %67, %68 : vector<2x64xf32>
    %70 = arith.negf %69 : vector<2x64xf32>
    %71 = math.exp %70 : vector<2x64xf32>
    %cst_23 = arith.constant 1.000000e+00 : f32
    %72 = vector.broadcast %cst_23 : f32 to vector<2x64xf32>
    %73 = arith.addf %72, %71 : vector<2x64xf32>
    %74 = arith.divf %72, %73 : vector<2x64xf32>
    %75 = vector.extract_strided_slice %74 {offsets = [0, 0], sizes = [2, 32], strides = [1, 1]} : vector<2x64xf32> to vector<2x32xf32>
    %76 = vector.extract_strided_slice %74 {offsets = [0, 32], sizes = [2, 32], strides = [1, 1]} : vector<2x64xf32> to vector<2x32xf32>
    %77 = vector.extract_strided_slice %66 {offsets = [0, 64], sizes = [2, 32], strides = [1, 1]} : vector<2x96xf32> to vector<2x32xf32>
    %78 = vector.extract_strided_slice %65 {offsets = [0, 64], sizes = [2, 32], strides = [1, 1]} : vector<2x96xf32> to vector<2x32xf32>
    %79 = arith.addf %78, %31 : vector<2x32xf32>
    %80 = arith.mulf %75, %79 : vector<2x32xf32>
    %81 = arith.addf %77, %80 : vector<2x32xf32>
    %82 = math.tanh %81 : vector<2x32xf32>
    %cst_24 = arith.constant 1.000000e+00 : f32
    %83 = vector.broadcast %cst_24 : f32 to vector<2x32xf32>
    %84 = arith.subf %83, %76 : vector<2x32xf32>
    %85 = arith.mulf %84, %82 : vector<2x32xf32>
    %86 = arith.mulf %76, %60 : vector<2x32xf32>
    %87 = arith.addf %85, %86 : vector<2x32xf32>
    %88 = vector.shape_cast %87 : vector<2x32xf32> to vector<2x32x1xf32>
    %89 = vector.broadcast %88 : vector<2x32x1xf32> to vector<2x32x96xf32>
    %90 = vector.broadcast %28 : vector<1x32x96xf32> to vector<2x32x96xf32>
    %91 = arith.mulf %89, %90 : vector<2x32x96xf32>
    %cst_25 = arith.constant dense<0.000000e+00> : vector<2x96xf32>
    %92 = vector.multi_reduction <add>, %91, %cst_25 [1] : vector<2x32x96xf32> to vector<2x96xf32>
    %93 = vector.extract_strided_slice %26 {offsets = [4, 0], sizes = [2, 96], strides = [1, 1]} : vector<8x96xf32> to vector<2x96xf32>
    %94 = vector.extract_strided_slice %93 {offsets = [0, 0], sizes = [2, 64], strides = [1, 1]} : vector<2x96xf32> to vector<2x64xf32>
    %95 = vector.extract_strided_slice %92 {offsets = [0, 0], sizes = [2, 64], strides = [1, 1]} : vector<2x96xf32> to vector<2x64xf32>
    %96 = arith.addf %94, %95 : vector<2x64xf32>
    %97 = arith.negf %96 : vector<2x64xf32>
    %98 = math.exp %97 : vector<2x64xf32>
    %cst_26 = arith.constant 1.000000e+00 : f32
    %99 = vector.broadcast %cst_26 : f32 to vector<2x64xf32>
    %100 = arith.addf %99, %98 : vector<2x64xf32>
    %101 = arith.divf %99, %100 : vector<2x64xf32>
    %102 = vector.extract_strided_slice %101 {offsets = [0, 0], sizes = [2, 32], strides = [1, 1]} : vector<2x64xf32> to vector<2x32xf32>
    %103 = vector.extract_strided_slice %101 {offsets = [0, 32], sizes = [2, 32], strides = [1, 1]} : vector<2x64xf32> to vector<2x32xf32>
    %104 = vector.extract_strided_slice %93 {offsets = [0, 64], sizes = [2, 32], strides = [1, 1]} : vector<2x96xf32> to vector<2x32xf32>
    %105 = vector.extract_strided_slice %92 {offsets = [0, 64], sizes = [2, 32], strides = [1, 1]} : vector<2x96xf32> to vector<2x32xf32>
    %106 = arith.addf %105, %31 : vector<2x32xf32>
    %107 = arith.mulf %102, %106 : vector<2x32xf32>
    %108 = arith.addf %104, %107 : vector<2x32xf32>
    %109 = math.tanh %108 : vector<2x32xf32>
    %cst_27 = arith.constant 1.000000e+00 : f32
    %110 = vector.broadcast %cst_27 : f32 to vector<2x32xf32>
    %111 = arith.subf %110, %103 : vector<2x32xf32>
    %112 = arith.mulf %111, %109 : vector<2x32xf32>
    %113 = arith.mulf %103, %87 : vector<2x32xf32>
    %114 = arith.addf %112, %113 : vector<2x32xf32>
    %115 = vector.shape_cast %114 : vector<2x32xf32> to vector<2x32x1xf32>
    %116 = vector.broadcast %115 : vector<2x32x1xf32> to vector<2x32x96xf32>
    %117 = vector.broadcast %28 : vector<1x32x96xf32> to vector<2x32x96xf32>
    %118 = arith.mulf %116, %117 : vector<2x32x96xf32>
    %cst_28 = arith.constant dense<0.000000e+00> : vector<2x96xf32>
    %119 = vector.multi_reduction <add>, %118, %cst_28 [1] : vector<2x32x96xf32> to vector<2x96xf32>
    %120 = vector.extract_strided_slice %26 {offsets = [6, 0], sizes = [2, 96], strides = [1, 1]} : vector<8x96xf32> to vector<2x96xf32>
    %121 = vector.extract_strided_slice %120 {offsets = [0, 0], sizes = [2, 64], strides = [1, 1]} : vector<2x96xf32> to vector<2x64xf32>
    %122 = vector.extract_strided_slice %119 {offsets = [0, 0], sizes = [2, 64], strides = [1, 1]} : vector<2x96xf32> to vector<2x64xf32>
    %123 = arith.addf %121, %122 : vector<2x64xf32>
    %124 = arith.negf %123 : vector<2x64xf32>
    %125 = math.exp %124 : vector<2x64xf32>
    %cst_29 = arith.constant 1.000000e+00 : f32
    %126 = vector.broadcast %cst_29 : f32 to vector<2x64xf32>
    %127 = arith.addf %126, %125 : vector<2x64xf32>
    %128 = arith.divf %126, %127 : vector<2x64xf32>
    %129 = vector.extract_strided_slice %128 {offsets = [0, 0], sizes = [2, 32], strides = [1, 1]} : vector<2x64xf32> to vector<2x32xf32>
    %130 = vector.extract_strided_slice %128 {offsets = [0, 32], sizes = [2, 32], strides = [1, 1]} : vector<2x64xf32> to vector<2x32xf32>
    %131 = vector.extract_strided_slice %120 {offsets = [0, 64], sizes = [2, 32], strides = [1, 1]} : vector<2x96xf32> to vector<2x32xf32>
    %132 = vector.extract_strided_slice %119 {offsets = [0, 64], sizes = [2, 32], strides = [1, 1]} : vector<2x96xf32> to vector<2x32xf32>
    %133 = arith.addf %132, %31 : vector<2x32xf32>
    %134 = arith.mulf %129, %133 : vector<2x32xf32>
    %135 = arith.addf %131, %134 : vector<2x32xf32>
    %136 = math.tanh %135 : vector<2x32xf32>
    %cst_30 = arith.constant 1.000000e+00 : f32
    %137 = vector.broadcast %cst_30 : f32 to vector<2x32xf32>
    %138 = arith.subf %137, %130 : vector<2x32xf32>
    %139 = arith.mulf %138, %136 : vector<2x32xf32>
    %140 = arith.mulf %130, %114 : vector<2x32xf32>
    %141 = arith.addf %139, %140 : vector<2x32xf32>
    %142 = vector.extract_strided_slice %60 {offsets = [0, 0], sizes = [1, 32], strides = [1, 1]} : vector<2x32xf32> to vector<1x32xf32>
    %143 = vector.extract_strided_slice %87 {offsets = [0, 0], sizes = [1, 32], strides = [1, 1]} : vector<2x32xf32> to vector<1x32xf32>
    %144 = vector.extract_strided_slice %114 {offsets = [0, 0], sizes = [1, 32], strides = [1, 1]} : vector<2x32xf32> to vector<1x32xf32>
    %145 = vector.extract_strided_slice %141 {offsets = [0, 0], sizes = [1, 32], strides = [1, 1]} : vector<2x32xf32> to vector<1x32xf32>
    %146 = vector.extract_strided_slice %60 {offsets = [1, 0], sizes = [1, 32], strides = [1, 1]} : vector<2x32xf32> to vector<1x32xf32>
    %147 = vector.extract_strided_slice %87 {offsets = [1, 0], sizes = [1, 32], strides = [1, 1]} : vector<2x32xf32> to vector<1x32xf32>
    %148 = vector.extract_strided_slice %114 {offsets = [1, 0], sizes = [1, 32], strides = [1, 1]} : vector<2x32xf32> to vector<1x32xf32>
    %149 = vector.extract_strided_slice %141 {offsets = [1, 0], sizes = [1, 32], strides = [1, 1]} : vector<2x32xf32> to vector<1x32xf32>
    %150 = tpu.concatenate %142, %143, %144, %145, %146, %147, %148, %149 in 0 : vector<1x32xf32>, vector<1x32xf32>, vector<1x32xf32>, vector<1x32xf32>, vector<1x32xf32>, vector<1x32xf32>, vector<1x32xf32>, vector<1x32xf32> -> vector<8x32xf32>
    %c0_31 = arith.constant 0 : index
    %c0_32 = arith.constant 0 : index
    %151 = vector.load %arg8[%c0_31, %c0_32] : memref<32x8xf32, #tpu.memory_space<vmem>>, vector<32x8xf32>
    %cst_33 = arith.constant dense<0.000000e+00> : vector<8x8xf32>
    %152 = tpu.matmul %150, %151, %cst_33 {dimension_numbers = #tpu.dot_dimension_numbers<[1], [0], [0], [1], [0, 0, 1, 1], [], []>} : vector<8x32xf32>, vector<32x8xf32>, vector<8x8xf32> -> vector<8x8xf32>
    %c0_34 = arith.constant 0 : index
    %c0_35 = arith.constant 0 : index
    %153 = vector.load %arg9[%c0_34, %c0_35] : memref<1x8xf32, #tpu.memory_space<vmem>>, vector<1x8xf32>
    %154 = vector.broadcast %153 : vector<1x8xf32> to vector<8x8xf32>
    %155 = arith.addf %152, %154 : vector<8x8xf32>
    %c0_36 = arith.constant 0 : index
    %c0_37 = arith.constant 0 : index
    %156 = vector.load %arg10[%c0_36, %c0_37] : memref<8x8xf32, #tpu.memory_space<vmem>>, vector<8x8xf32>
    tpu.vector_store %arg10[%c0_36, %c0_37], %155 {strides = array<i32>} : memref<8x8xf32, #tpu.memory_space<vmem>>, vector<8x8xf32>,
    %c0_38 = arith.constant 0 : index
    %c0_39 = arith.constant 0 : index
    %c0_40 = arith.constant 0 : index
    %157 = vector.load %arg11[%c0_38, %c0_39, %c0_40] : memref<1x2x32xf32, #tpu.memory_space<vmem>>, vector<1x2x32xf32>
    %158 = vector.shape_cast %157 : vector<1x2x32xf32> to vector<2x32xf32>
    %159 = vector.shape_cast %141 : vector<2x32xf32> to vector<1x2x32xf32>
    tpu.vector_store %arg11[%c0_38, %c0_39, %c0_40], %159 {strides = array<i32>} : memref<1x2x32xf32, #tpu.memory_space<vmem>>, vector<1x2x32xf32>,
    return
  }
}

</mosaic_0001>

<bundles_post_ra>
// kernel: qmix_agent_forward.1
= control target key start
LH: loop header
LB: loop body
LE: loop exit
PB: predicated region body
PF: predicated region fallthrough
CT: control target
= control target key end

     0   :  { %17 = vsyncpa [#allocation3], 0  ;;  %s1524_s0 = inlined_call_operand.hbm [shape: f32[8,16], index: 0, kind: input, shape index: {}]   ;;  %s1525_s1 = inlined_call_operand.hbm [shape: f32[1,2,32], index: 1, kind: input, shape index: {}]   ;;  %s1526_s2 = inlined_call_operand.vmem [shape: f32[16,64], index: 2, kind: input, shape index: {}]   ;;  %s1527_s3 = inlined_call_operand.vmem [shape: f32[1,64], index: 3, kind: input, shape index: {}]   ;;  %s1528_s4 = inlined_call_operand.hbm [shape: f32[64,96], index: 4, kind: input, shape index: {}]   ;;  %s1529_s5 = inlined_call_operand.vmem [shape: f32[32,96], index: 5, kind: input, shape index: {}]   ;;  %s1530_s6 = inlined_call_operand.vmem [shape: f32[1,96], index: 6, kind: input, shape index: {}]   ;;  %s1531_s7 = inlined_call_operand.vmem [shape: f32[1,96], index: 7, kind: input, shape index: {}]   ;;  %s1532_s8 = inlined_call_operand.vmem [shape: f32[32,8], index: 8, kind: input, shape index: {}]   ;;  %s1533_s9 = inlined_call_operand.vmem [shape: f32[1,8], index: 9, kind: input, shape index: {}]   ;;  %s1534_s10 = inlined_call_operand.hbm [shape: f32[8,8], index: 10, kind: output, shape index: {0}]   ;;  %s1535_s11 = inlined_call_operand.hbm [shape: f32[1,2,32], index: 11, kind: output, shape index: {1}]  }
   0x1   :  { %18 = vsyncpa [#allocation6], 0 }
   0x2   :  { %19 = vsyncpa [#allocation4], 0 }
   0x3   :  { %20 = vsyncpa [#allocation10], 0  ;;  %s1200_s17 = smov [#allocation5]   ;;  %s1201_s19 = smov [#allocation2]  }
   0x4   :  { %s37_s18 = sshll.u32 %s1200_s17, 4  ;;  %s27_s20 = sshll.u32 %s1201_s19, 4  ;;  %s38_s18 = int_to_ptr.vmem [resolvable:$true] %s37_s18  ;;  %s28_s20 = int_to_ptr.vmem [resolvable:$true] %s27_s20 }
   0x5   :  { %s1100_s21 = scalar_lea.vmem %s38_s18, 32  ;;  %p1105_p1 = scmp.lt.s32.totalorder %s38_s18, %s38_s18 }
   0x6   :  { %p1101_p0 = scmp.ne.s32.totalorder %s38_s18, %s1100_s21  ;;  %p1106_p2 = scmp.lt.s32.totalorder %s1100_s21, %s1100_s21 }
   0x8   :  { %p1107_p3 = por %p1106_p2, %p1105_p1 }
   0xa   :  { %p1108_p4 = pnand %p1107_p3, %p1101_p0 }
   0xc   :  { %1111 = shalt.err (!%p1108_p4)
}
   0xd   :  { %40 = dma.hbm_to_vmem [thread:$0]  %s1525_s1, 32, %s38_s18, [#allocation6]  }
   0xe   :  { %s1120_s24 = scalar_lea.vmem %s28_s20, 128  ;;  %p1125_p6 = scmp.lt.s32.totalorder %s28_s20, %s28_s20 }
   0xf   :  { %p1121_p5 = scmp.ne.s32.totalorder %s28_s20, %s1120_s24  ;;  %p1126_p7 = scmp.lt.s32.totalorder %s1120_s24, %s1120_s24 }
  0x11   :  { %p1127_p8 = por %p1126_p7, %p1125_p6 }
  0x13   :  { %p1128_p9 = pnand %p1127_p8, %p1121_p5 }
  0x15   :  { %1131 = shalt.err (!%p1128_p9)
}
  0x16   :  { %30 = dma.hbm_to_vmem [thread:$0]  %s1524_s0, 128, %s28_s20, [#allocation3]  }
  0x17   :  { %s1202_s27 = smov [#allocation7]  }
  0x18   :  { %s50_s28 = sshll.u32 %s1202_s27, 4  ;;  %s51_s28 = int_to_ptr.vmem [resolvable:$true] %s50_s28 }
  0x19   :  { %s1140_s29 = scalar_lea.vmem %s51_s28, 1024  ;;  %p1145_p11 = scmp.lt.s32.totalorder %s51_s28, %s51_s28 }
  0x1a   :  { %p1141_p10 = scmp.ne.s32.totalorder %s51_s28, %s1140_s29  ;;  %p1146_p12 = scmp.lt.s32.totalorder %s1140_s29, %s1140_s29 }
  0x1c   :  { %p1147_p13 = por %p1146_p12, %p1145_p11 }
  0x1e   :  { %p1148_p0 = pnand %p1147_p13, %p1141_p10 }
  0x20   :  { %1151 = shalt.err (!%p1148_p0)
}
  0x21   :  { %s1203_s1 = smov 128   ;;  %s1204_s30 = smov 8  }
  0x22   :  { %56 = dma.hbm_to_vmem [thread:$0]  %s1528_s4, 1024, %s51_s28, [#allocation6], %s1203_s1, %s1203_s1, %s1204_s30  }
  0x23   :  { %1192 = dma.done.wait [#allocation3], 128  }
  0x24   :  { %1193 = vsyncadd [#allocation3], 4294967168 }
  0x25   :  { %1194 = dma.done.wait [#allocation6], 1056  }
  0x26   :  { %1195 = vsyncadd [#allocation6], 4294966240  ;;  %v244_v0 = vlaneseq  ;;  %v1205_v1 = vmov 0.0   ;;  %vm1206_vm0 = vmmov 0   ;;  %v83_v3 = vld [vmem:[#allocation7 + $0x38] sm:$0xff]  ;;  %v82_v4 = vld [vmem:[#allocation7 + $0x30] sm:$0xff] }
  0x27   :  { %1019 = vmatprep.subr.mxu1 %v1205_v1  ;;  %1035 = vmatprep.mubr.msk.f32.mxu1 %vm1206_vm0, %v1205_v1  ;;  %vm86_vm1 = vcmask 523264   ;;  %v81_v7 = vld [vmem:[#allocation7 + $0x28] sm:$0xff]  ;;  %v84_v8 = vld [vmem:[%s1526_s2] sm:$0xff]  ;;  %v1296_v9 = vld [vmem:[#allocation5] sm:$0x3]  ;;  %vm412_vm2 = vcmask 785408  }
  0x28   :  { %v1285_v2 = vshrl.u32 %v244_v0, 7  ;;  %1000 = vmatprep.subr.mxu0 %v83_v3  ;;  %1020 = vmatpush3.msra.mxu1 %v83_v3  ;;  %v80_v10 = vld [vmem:[#allocation7 + $0x20] sm:$0xff]  ;;  %v79_v13 = vld [vmem:[#allocation7 + $0x18] sm:$0xff]  ;;  %v78_v14 = vld [vmem:[#allocation7 + $0x10] sm:$0xff]  ;;  %vm441_vm3 = vcmask 1041409   ;;  %s1207_s25 = smov 64  }
  0x29   :  { %1001 = vmatpush3.msra.mxu0 %v83_v3  ;;  %1021 = vmatprep.subr.mxu1 %v1205_v1  ;;  %v77_v15 = vld [vmem:[#allocation7 + $0x8] sm:$0xff]  ;;  %v76_v16 = vld [vmem:[#allocation7] sm:$0xff]  ;;  %v168_v18 = vld [vmem:[%s1527_s3] sm:$0x1]  ;;  %vm263_vm4 = vcmask 1040384   ;;  %vm265_vm5 = vcmask 1041408  }
  0x2a   :  { %v387_v5 = vsub.s32 1, %v1285_v2  ;;  %v1289_v6 = vsub.s32 0, %v1285_v2  ;;  %1002 = vmatprep.subr.mxu0 %v82_v4  ;;  %1016 = vmatprep.mubr.msk.f32.mxu0 %vm86_vm1, %v84_v8  ;;  %v85_v17 = vld [vmem:[%s1526_s2 + $0x8] sm:$0xff]  ;;  %v1326_v19 = vld [vmem:[%s1529_s5] sm:$0xff]  ;;  %v1342_v31 = vld [vmem:[%s1529_s5 + $0x10] sm:$0xff]  ;;  %vm267_vm6 = vcmask 1042432  }
  0x2b   :  { %1003 = vmatpush3.msra.mxu0 %v82_v4  ;;  %1022 = vmatpush3.msra.mxu1 %v82_v4  ;;  %v1333_v24 = vld [vmem:[%s1529_s5 + $0x8] sm:$0xff]  ;;  %v1351_v40 = vld [vmem:[%s1529_s5 + $0x18] sm:$0xff]  ;;  %v243_v58 = vld [vmem:[%s1531_s7] sm:$0x1]  ;;  %vm269_vm7 = vcmask 1043456   ;;  %vm271_vm8 = vcmask 1044480  }
  0x2c   :  { %v388_v11 = vrot.slane %v1296_v9, %v387_v5  ;;  %v369_v12 = vrot.slane %v1296_v9, %v1289_v6  ;;  %1004 = vmatprep.subr.mxu0 %v81_v7  ;;  %1023 = vmatprep.subr.mxu1 %v1205_v1  ;;  %v1363_v62 = vrot.slane %v243_v58, %v1289_v6  ;;  %vm273_vm9 = vcmask 1045504   ;;  %s1209_s27 = smov 96  }
  0x2d   :  { %1005 = vmatpush3.msra.mxu0 %v81_v7  ;;  %1024 = vmatpush3.msra.mxu1 %v81_v7  ;;  %vm275_vm10 = vcmask 1046528   ;;  %vm281_vm11 = vcmask 130048   ;;  %vm555_vm13 = vcmask 1043459   ;;  %vm669_vm14 = vcmask 1045509  }
  0x2e   :  { %390 = vbcast.lane.b32.xlu0 %v388_v11, 256  ;;  %1006 = vmatprep.subr.mxu0 %v80_v10  ;;  %vm783_vm15 = vcmask 1047559  }
  0x2f   :  { %371 = vbcast.lane.b32.xlu1 %v369_v12, 256  ;;  %1007 = vmatpush3.msra.mxu0 %v80_v10 }
  0x30   :  { %1008 = vmatprep.subr.mxu0 %v79_v13  ;;  %1025 = vmatprep.subr.mxu1 %v1205_v1 }
  0x31   :  { %1009 = vmatpush3.msra.mxu0 %v79_v13  ;;  %1026 = vmatpush3.msra.mxu1 %v80_v10 }
  0x32   :  { %394 = vbcast.lane.b32.xlu0 %v388_v11, 264  ;;  %1010 = vmatprep.subr.mxu0 %v78_v14 }
  0x33   :  { %375 = vbcast.lane.b32.xlu1 %v369_v12, 264  ;;  %1011 = vmatpush3.msra.mxu0 %v78_v14 }
  0x34   :  { %1012 = vmatprep.subr.mxu0 %v77_v15  ;;  %1027 = vmatprep.subr.mxu1 %v1205_v1 }
  0x35   :  { %1013 = vmatpush3.msra.mxu0 %v77_v15  ;;  %1028 = vmatpush3.msra.mxu1 %v79_v13 }
  0x36   :  { %398 = vbcast.lane.b32.xlu0 %v388_v11, 272  ;;  %1014 = vmatprep.subr.mxu0 %v76_v16 }
  0x37   :  { %379 = vbcast.lane.b32.xlu1 %v369_v12, 272  ;;  %1015 = vmatpush3.msra.mxu0 %v76_v16 }
  0x38   :  { %1017 = vmatmul.mubr.msk.f32.vlgmr.msra.gmra.mxu0 %vm86_vm1, %v85_v17  ;;  %1029 = vmatprep.subr.mxu1 %v1205_v1 }
  0x39   :  { %1030 = vmatpush3.msra.mxu1 %v78_v14  ;;  %1038 = vmatprep.subr.mxu0 %v1205_v1  ;;  %v249_v14 = vld [vmem:[#allocation2] sm:$0xff] }
  0x3a   :  { %402 = vbcast.lane.b32.xlu0 %v388_v11, 280  ;;  %1031 = vmatprep.subr.mxu1 %v1205_v1 }
  0x3b   :  { %383 = vbcast.lane.b32.xlu1 %v369_v12, 280  ;;  %1032 = vmatpush3.msra.mxu1 %v77_v15  ;;  %v251_v15 = vrot.slane %v249_v14, 3 }
  0x3c   :  { %1033 = vmatprep.subr.mxu1 %v1205_v1  ;;  %1042 = vmatprep.mubr.msk.f32.mxu0 %vm1206_vm0, %v1205_v1 }
  0x3d   :  { %1034 = vmatpush3.msra.mxu1 %v76_v16  ;;  %v253_v16 = vrot.slane %v249_v14, 7  ;;  %v264_v17 = vsel %vm263_vm4, %v249_v14, %v251_v15 }
  0x3e   :  { %1036 = vmatmul.mubr.msk.f32.vlgmr.msra.gmra.mxu1 %vm86_vm1, %v168_v18  ;;  %1045 = vmatprep.subr.mxu1 %v1205_v1  ;;  %v255_v18 = vrot.slane %v249_v14, 2  ;;  %vm853_vm1 = vcmask 261120  }
  0x3f   :  { %1053 = vmatprep.mubr.msk.f32.mxu1 %vm1206_vm0, %v1205_v1  ;;  %vm931_vm0 = vcmask 261126  }
  0xa0   :  { %v391_v20 = vpop.permute.xlu0 %390 }
  0xa1   :  { %v408_v21 = vmul.f32 %v391_v20, %v1326_v19  ;;  %v372_v22 = vpop.permute.xlu1 %371  ;;  %v266_v20 = vsel %vm265_vm5, %v264_v17, %v253_v16 }
  0xa2   :  { %v404_v23 = vmul.f32 %v372_v22, %v1326_v19  ;;  %v268_v22 = vsel %vm267_vm6, %v266_v20, %v255_v18 }
  0xa3   :  { %v426_v26 = vsel %vm412_vm2, %v408_v21, 0.0  ;;  %v257_v21 = vrot.slane %v249_v14, 6 }
  0xa4   :  { %v395_v25 = vpop.permute.xlu0 %394  ;;  %v413_v29 = vsel %vm412_vm2, %v404_v23, 0.0  ;;  %v259_v23 = vrot.slane %v249_v14, 1 }
  0xa5   :  { %v409_v27 = vmul.f32 %v395_v25, %v1333_v24  ;;  %v376_v28 = vpop.permute.xlu1 %375  ;;  %v270_v25 = vsel %vm269_vm7, %v268_v22, %v257_v21 }
  0xa6   :  { %v405_v30 = vmul.f32 %v376_v28, %v1333_v24 }
  0xa7   :  { %v427_v32 = vsel %vm412_vm2, %v409_v27, 0.0  ;;  %v272_v27 = vsel %vm271_vm8, %v270_v25, %v259_v23 }
  0xa8   :  { %v428_v33 = vadd.f32 %v427_v32, %v426_v26  ;;  %v414_v34 = vsel %vm412_vm2, %v405_v30, 0.0  ;;  %v399_v35 = vpop.permute.xlu0 %398  ;;  %v261_v26 = vrot.slane %v249_v14, 5 }
  0xa9   :  { %v415_v36 = vadd.f32 %v414_v34, %v413_v29  ;;  %v410_v37 = vmul.f32 %v399_v35, %v1342_v31  ;;  %v380_v38 = vpop.permute.xlu1 %379  ;;  %v245_v35 = vand.u32 127, %v244_v0 }
  0xaa   :  { %v406_v39 = vmul.f32 %v380_v38, %v1342_v31  ;;  %v274_v28 = vsel %vm273_vm9, %v272_v27, %v261_v26 }
  0xab   :  { %v429_v41 = vsel %vm412_vm2, %v410_v37, 0.0  ;;  %v276_v30 = vsel %vm275_vm10, %v274_v28, %v249_v14  ;;  %vm246_vm12 = vcmp.lt.s32.totalorder %v245_v35, 64 }
  0xac   :  { %v430_v42 = vadd.f32 %v429_v41, %v428_v33  ;;  %v416_v43 = vsel %vm412_vm2, %v406_v39, 0.0  ;;  %v403_v44 = vpop.permute.xlu0 %402  ;;  %v247_v38 = vsel %vm246_vm12, %v243_v58, 0.0 }
  0xad   :  { %v417_v45 = vadd.f32 %v416_v43, %v415_v36  ;;  %v411_v46 = vmul.f32 %v403_v44, %v1351_v40  ;;  %v384_v47 = vpop.permute.xlu1 %383  ;;  %v169_v36 = vld [vmem:[%s1530_s6] sm:$0x1]  ;;  %s1208_s6 = smov 32  }
  0xae   :  { %v407_v48 = vmul.f32 %v384_v47, %v1351_v40 }
  0xaf   :  { %v431_v49 = vsel %vm412_vm2, %v411_v46, 0.0 }
  0xb0   :  { %v432_v50 = vadd.f32 %v431_v49, %v430_v42  ;;  %v418_v51 = vsel %vm412_vm2, %v407_v48, 0.0 }
  0xb1   :  { %v419_v52 = vadd.f32 %v418_v51, %v417_v45 }
  0xb2   :  { %v433_v53 = vrot.slane %v432_v50, 4 }
  0xb3   :  { %v420_v54 = vrot.slane %v419_v52, 4 }
  0xb4   :  { %v434_v55 = vadd.f32 %v433_v53, %v432_v50 }
  0xb5   :  { %v421_v56 = vadd.f32 %v420_v54, %v419_v52 }
  0xb6   :  { %v435_v57 = vrot.slane %v434_v55, 2 }
  0xb7   :  { %v422_v59 = vrot.slane %v421_v56, 2 }
  0xb8   :  { %v436_v60 = vadd.f32 %v435_v57, %v434_v55 }
  0xb9   :  { %v423_v61 = vadd.f32 %v422_v59, %v421_v56 }
  0xba   :  { %v437_v63 = vrot.slane %v436_v60, 1 }
  0xbb   :  { %v424_v3 = vrot.slane %v423_v61, 1 }
  0xbc   :  { %v438_v4 = vadd.f32 %v437_v63, %v436_v60 }
  0xbd   :  { %v425_v7 = vadd.f32 %v424_v3, %v423_v61 }
  0xbe   :  { %v452_v8 = vadd.f32 %v438_v4, %v1363_v62 }
  0xbf   :  { %v442_v10 = vsel %vm441_vm3, %v438_v4, %v425_v7  ;;  %v451_v11 = vadd.f32 %v425_v7, %v1363_v62 }
  0xc0   :  { %v455_v12 = vrot.slane %v452_v8, 7 }
  0xc2   :  { %v456_v13 = vsel %vm441_vm3, %v455_v12, %v451_v11 }
  0xc3   :  { %457 = vrot.lane.b32.xlu0 %v456_v13, %s1207_s25 }
  0xf8   :  { %v1018_v29 = vpop.f32.mrf.mxu0 }
  0xf9   :  { %1039 = vmatpush3.msra.mxu0 %v1018_v29 }
  0xfa   :  { %v159_v32 = vpop.f32.mrf.mxu0  ;;  %1040 = vmatprep.subr.mxu0 %v1205_v1 }
  0xfb   :  { %1041 = vmatpush3.msra.mxu0 %v159_v32 }
  0xfc   :  { %1043 = vmatmul.mubr.msk.f32.vlgmr.msra.gmra.mxu0 %vm281_vm11, %v276_v30 }
  0xfe   :  { %v239_v33 = vpop.f32.mrf.mxu1 }
  0xff   :  { %v240_v37 = vadd.f32 %v239_v33, %v169_v36 }
 0x100   :  { %v1037_v34 = vpop.f32.mrf.mxu1 }
 0x101   :  { %v248_v39 = vadd.f32 %v247_v38, %v240_v37 }
 0x103   :  { %v280_v41 = vrot.slane %v248_v39, %v1289_v6 }
 0x135   :  { %v458_v49 = vpop.permute.xlu0 %457 }
 0x1bc   :  { %v351_v42 = vpop.f32.mrf.mxu0 }
 0x1bd   :  { %v1381_v43 = vadd.f32 %v351_v42, %v280_v41 }
 0x1be   :  { %v1044_v44 = vpop.f32.mrf.mxu0 }
 0x1bf   :  { %v444_v45 = vadd.f32 %v442_v10, %v1381_v43 }
 0x1c1   :  { %v967_v46 = vmul.f32 -1.442695, %v444_v45 }
 0x1c3   :  { %1068 = vpow2.f32 %v967_v46 }
 0x1d0   :  { %v1069_v47 = vpop.eup %1068 }
 0x1d1   :  { %v448_v0 = vadd.f32 1.0, %v1069_v47 }
 0x1d3   :  { %1070 = vrcp.f32 %v448_v0 }
 0x1e0   :  { %v1071_v48 = vpop.eup %1070 }
 0x1e1   :  { %v460_v50 = vmul.f32 %v1071_v48, %v458_v49  ;;  %v467_v55 = vsub.f32 1.0, %v1071_v48 }
 0x1e3   :  { %462 = vrot.lane.b32.xlu1 %v460_v50, %s1207_s25 }
 0x1e7   :  { %474 = vrot.lane.b32.xlu1 %v1296_v9, %s1208_s6 }
 0x255   :  { %v463_v51 = vpop.permute.xlu1 %462 }
 0x256   :  { %v465_v52 = vadd.f32 %v463_v51, %v1381_v43 }
 0x258   :  { %1072 = vtanh.f32 %v465_v52 }
 0x259   :  { %v475_v54 = vpop.permute.xlu1 %474 }
 0x25a   :  { %v477_v57 = vmul.f32 %v1071_v48, %v475_v54 }
 0x265   :  { %v1073_v53 = vpop.eup %1072 }
 0x266   :  { %469 = vrot.lane.b32.xlu0 %v1073_v53, %s1209_s27 }
 0x2d8   :  { %v470_v56 = vpop.permute.xlu0 %469 }
 0x2d9   :  { %v472_v58 = vmul.f32 %v470_v56, %v467_v55 }
 0x2db   :  { %v1388_v59 = vadd.f32 %v477_v57, %v472_v58 }
 0x2dd   :  { %v482_v60 = vrot.slane %v1388_v59, %v1289_v6  ;;  %v502_v9 = vrot.slane %v1388_v59, %v387_v5 }
 0x2df   :  { %489 = vbcast.lane.b32.xlu1 %v482_v60, 296  ;;  %485 = vbcast.lane.b32.xlu0 %v482_v60, 288 }
 0x2e3   :  { %509 = vbcast.lane.b32.xlu1 %v502_v9, 296  ;;  %505 = vbcast.lane.b32.xlu0 %v502_v9, 288 }
 0x2e7   :  { %513 = vbcast.lane.b32.xlu1 %v502_v9, 304  ;;  %493 = vbcast.lane.b32.xlu0 %v482_v60, 304 }
 0x2eb   :  { %517 = vbcast.lane.b32.xlu1 %v502_v9, 312  ;;  %497 = vbcast.lane.b32.xlu0 %v482_v60, 312 }
 0x351   :  { %v490_v61 = vpop.permute.xlu1 %489  ;;  %v486_v63 = vpop.permute.xlu0 %485 }
 0x352   :  { %v520_v3 = vmul.f32 %v490_v61, %v1333_v24  ;;  %v519_v4 = vmul.f32 %v486_v63, %v1326_v19 }
 0x354   :  { %v528_v5 = vsel %vm412_vm2, %v520_v3, 0.0  ;;  %v527_v11 = vsel %vm412_vm2, %v519_v4, 0.0 }
 0x355   :  { %v510_v7 = vpop.permute.xlu1 %509  ;;  %v506_v6 = vpop.permute.xlu0 %505  ;;  %v529_v21 = vadd.f32 %v528_v5, %v527_v11  ;;  %v595_v5 = vsub.s32 2, %v1285_v2 }
 0x356   :  { %v524_v8 = vmul.f32 %v510_v7, %v1333_v24  ;;  %v523_v10 = vmul.f32 %v506_v6, %v1326_v19  ;;  %v589_v7 = vrot.slane %v1388_v59, 6 }
 0x358   :  { %v541_v14 = vsel %vm412_vm2, %v524_v8, 0.0  ;;  %v540_v15 = vsel %vm412_vm2, %v523_v10, 0.0 }
 0x359   :  { %v514_v12 = vpop.permute.xlu1 %513  ;;  %v494_v13 = vpop.permute.xlu0 %493  ;;  %v542_v22 = vadd.f32 %v541_v14, %v540_v15 }
 0x35a   :  { %v525_v16 = vmul.f32 %v514_v12, %v1342_v31  ;;  %v521_v17 = vmul.f32 %v494_v13, %v1342_v31  ;;  %v615_v13 = vsub.s32 3, %v1285_v2 }
 0x35c   :  { %v543_v18 = vsel %vm412_vm2, %v525_v16, 0.0  ;;  %v530_v20 = vsel %vm412_vm2, %v521_v17, 0.0 }
 0x35d   :  { %v518_v23 = vpop.permute.xlu1 %517  ;;  %v498_v25 = vpop.permute.xlu0 %497  ;;  %v544_v28 = vadd.f32 %v543_v18, %v542_v22  ;;  %v531_v29 = vadd.f32 %v530_v20, %v529_v21 }
 0x35e   :  { %v526_v26 = vmul.f32 %v518_v23, %v1351_v40  ;;  %v522_v27 = vmul.f32 %v498_v25, %v1351_v40 }
 0x360   :  { %v545_v30 = vsel %vm412_vm2, %v526_v26, 0.0  ;;  %v532_v32 = vsel %vm412_vm2, %v522_v27, 0.0 }
 0x361   :  { %v546_v33 = vadd.f32 %v545_v30, %v544_v28  ;;  %v533_v34 = vadd.f32 %v532_v32, %v531_v29 }
 0x363   :  { %v547_v35 = vrot.slane %v546_v33, 4  ;;  %v534_v36 = vrot.slane %v533_v34, 4 }
 0x365   :  { %v548_v37 = vadd.f32 %v547_v35, %v546_v33  ;;  %v535_v38 = vadd.f32 %v534_v36, %v533_v34 }
 0x367   :  { %v549_v39 = vrot.slane %v548_v37, 2  ;;  %v536_v41 = vrot.slane %v535_v38, 2 }
 0x369   :  { %v550_v42 = vadd.f32 %v549_v39, %v548_v37  ;;  %v537_v44 = vadd.f32 %v536_v41, %v535_v38 }
 0x36b   :  { %v551_v45 = vrot.slane %v550_v42, 1  ;;  %v538_v46 = vrot.slane %v537_v44, 1 }
 0x36d   :  { %v539_v47 = vadd.f32 %v538_v46, %v537_v44  ;;  %v552_v0 = vadd.f32 %v551_v45, %v550_v42 }
 0x36f   :  { %v565_v48 = vadd.f32 %v539_v47, %v1363_v62  ;;  %v566_v49 = vadd.f32 %v552_v0, %v1363_v62  ;;  %v556_v50 = vsel %vm555_vm13, %v552_v0, %v539_v47 }
 0x370   :  { %v558_v54 = vadd.f32 %v556_v50, %v1381_v43 }
 0x371   :  { %v569_v51 = vrot.slane %v565_v48, 6  ;;  %v570_v52 = vrot.slane %v566_v49, 5 }
 0x372   :  { %v968_v55 = vmul.f32 -1.442695, %v558_v54 }
 0x373   :  { %v571_v53 = vsel %vm555_vm13, %v570_v52, %v569_v51 }
 0x374   :  { %572 = vrot.lane.b32.xlu0 %v571_v53, %s1207_s25  ;;  %1074 = vpow2.f32 %v968_v55 }
 0x381   :  { %v1075_v56 = vpop.eup %1074 }
 0x382   :  { %v562_v57 = vadd.f32 1.0, %v1075_v56 }
 0x384   :  { %1076 = vrcp.f32 %v562_v57 }
 0x391   :  { %v1077_v58 = vpop.eup %1076 }
 0x392   :  { %v582_v4 = vsub.f32 1.0, %v1077_v58  ;;  %v591_v8 = vmul.f32 %v1077_v58, %v589_v7 }
 0x3e6   :  { %v573_v60 = vpop.permute.xlu0 %572 }
 0x3e7   :  { %v575_v9 = vmul.f32 %v1077_v58, %v573_v60 }
 0x3e9   :  { %577 = vrot.lane.b32.xlu1 %v575_v9, %s1207_s25 }
 0x45b   :  { %v578_v61 = vpop.permute.xlu1 %577 }
 0x45c   :  { %v580_v63 = vadd.f32 %v578_v61, %v1381_v43 }
 0x45e   :  { %1078 = vtanh.f32 %v580_v63 }
 0x46b   :  { %v1079_v3 = vpop.eup %1078 }
 0x46c   :  { %584 = vrot.lane.b32.xlu0 %v1079_v3, %s1209_s27 }
 0x4de   :  { %v585_v6 = vpop.permute.xlu0 %584 }
 0x4df   :  { %v587_v10 = vmul.f32 %v585_v6, %v582_v4 }
 0x4e1   :  { %v1420_v11 = vadd.f32 %v591_v8, %v587_v10 }
 0x4e3   :  { %v596_v12 = vrot.slane %v1420_v11, %v595_v5  ;;  %v616_v14 = vrot.slane %v1420_v11, %v615_v13 }
 0x4e5   :  { %603 = vbcast.lane.b32.xlu0 %v596_v12, 296  ;;  %599 = vbcast.lane.b32.xlu1 %v596_v12, 288 }
 0x4e9   :  { %623 = vbcast.lane.b32.xlu0 %v616_v14, 296  ;;  %619 = vbcast.lane.b32.xlu1 %v616_v14, 288 }
 0x4ed   :  { %627 = vbcast.lane.b32.xlu0 %v616_v14, 304  ;;  %607 = vbcast.lane.b32.xlu1 %v596_v12, 304 }
 0x4f1   :  { %631 = vbcast.lane.b32.xlu0 %v616_v14, 312  ;;  %611 = vbcast.lane.b32.xlu1 %v596_v12, 312 }
 0x557   :  { %v604_v15 = vpop.permute.xlu0 %603  ;;  %v600_v16 = vpop.permute.xlu1 %599 }
 0x558   :  { %v634_v17 = vmul.f32 %v604_v15, %v1333_v24  ;;  %v633_v18 = vmul.f32 %v600_v16, %v1326_v19 }
 0x55a   :  { %v642_v25 = vsel %vm412_vm2, %v634_v17, 0.0  ;;  %v641_v26 = vsel %vm412_vm2, %v633_v18, 0.0 }
 0x55b   :  { %v624_v20 = vpop.permute.xlu0 %623  ;;  %v620_v21 = vpop.permute.xlu1 %619  ;;  %v643_v36 = vadd.f32 %v642_v25, %v641_v26  ;;  %v709_v26 = vsub.s32 4, %v1285_v2 }
 0x55c   :  { %v638_v22 = vmul.f32 %v624_v20, %v1333_v24  ;;  %v637_v23 = vmul.f32 %v620_v21, %v1326_v19  ;;  %v703_v21 = vrot.slane %v1420_v11, 6 }
 0x55e   :  { %v655_v29 = vsel %vm412_vm2, %v638_v22, 0.0  ;;  %v654_v30 = vsel %vm412_vm2, %v637_v23, 0.0 }
 0x55f   :  { %v628_v27 = vpop.permute.xlu0 %627  ;;  %v608_v28 = vpop.permute.xlu1 %607  ;;  %v656_v37 = vadd.f32 %v655_v29, %v654_v30 }
 0x560   :  { %v639_v32 = vmul.f32 %v628_v27, %v1342_v31  ;;  %v635_v33 = vmul.f32 %v608_v28, %v1342_v31  ;;  %v821_v27 = vrot.slane %v1420_v11, 1 }
 0x562   :  { %v657_v34 = vsel %vm412_vm2, %v639_v32, 0.0  ;;  %v644_v35 = vsel %vm412_vm2, %v635_v33, 0.0  ;;  %v729_v32 = vsub.s32 5, %v1285_v2  ;;  %v832_v33 = vsel %vm263_vm4, %v1388_v59, %v821_v27 }
 0x563   :  { %v632_v38 = vpop.permute.xlu0 %631  ;;  %v612_v39 = vpop.permute.xlu1 %611  ;;  %v658_v44 = vadd.f32 %v657_v34, %v656_v37  ;;  %v645_v45 = vadd.f32 %v644_v35, %v643_v36 }
 0x564   :  { %v640_v41 = vmul.f32 %v632_v38, %v1351_v40  ;;  %v636_v42 = vmul.f32 %v612_v39, %v1351_v40 }
 0x566   :  { %v659_v46 = vsel %vm412_vm2, %v640_v41, 0.0  ;;  %v646_v47 = vsel %vm412_vm2, %v636_v42, 0.0 }
 0x567   :  { %v660_v0 = vadd.f32 %v659_v46, %v658_v44  ;;  %v647_v48 = vadd.f32 %v646_v47, %v645_v45 }
 0x569   :  { %v661_v49 = vrot.slane %v660_v0, 4  ;;  %v648_v50 = vrot.slane %v647_v48, 4 }
 0x56b   :  { %v662_v51 = vadd.f32 %v661_v49, %v660_v0  ;;  %v649_v52 = vadd.f32 %v648_v50, %v647_v48 }
 0x56d   :  { %v663_v53 = vrot.slane %v662_v51, 2  ;;  %v650_v54 = vrot.slane %v649_v52, 2 }
 0x56f   :  { %v664_v55 = vadd.f32 %v663_v53, %v662_v51  ;;  %v651_v56 = vadd.f32 %v650_v54, %v649_v52 }
 0x571   :  { %v665_v57 = vrot.slane %v664_v55, 1  ;;  %v652_v58 = vrot.slane %v651_v56, 1 }
 0x573   :  { %v653_v60 = vadd.f32 %v652_v58, %v651_v56  ;;  %v666_v9 = vadd.f32 %v665_v57, %v664_v55 }
 0x575   :  { %v679_v61 = vadd.f32 %v653_v60, %v1363_v62  ;;  %v680_v63 = vadd.f32 %v666_v9, %v1363_v62  ;;  %v670_v3 = vsel %vm669_vm14, %v666_v9, %v653_v60 }
 0x576   :  { %v672_v8 = vadd.f32 %v670_v3, %v1381_v43 }
 0x577   :  { %v683_v4 = vrot.slane %v679_v61, 4  ;;  %v684_v7 = vrot.slane %v680_v63, 3 }
 0x578   :  { %v969_v10 = vmul.f32 -1.442695, %v672_v8 }
 0x579   :  { %v685_v6 = vsel %vm669_vm14, %v684_v7, %v683_v4 }
 0x57a   :  { %686 = vrot.lane.b32.xlu1 %v685_v6, %s1207_s25  ;;  %1080 = vpow2.f32 %v969_v10 }
 0x587   :  { %v1081_v5 = vpop.eup %1080 }
 0x588   :  { %v676_v12 = vadd.f32 1.0, %v1081_v5 }
 0x58a   :  { %1082 = vrcp.f32 %v676_v12 }
 0x597   :  { %v1083_v13 = vpop.eup %1082 }
 0x598   :  { %v696_v20 = vsub.f32 1.0, %v1083_v13  ;;  %v705_v23 = vmul.f32 %v1083_v13, %v703_v21 }
 0x5ec   :  { %v687_v14 = vpop.permute.xlu1 %686 }
 0x5ed   :  { %v689_v15 = vmul.f32 %v1083_v13, %v687_v14 }
 0x5ef   :  { %691 = vrot.lane.b32.xlu0 %v689_v15, %s1207_s25 }
 0x661   :  { %v692_v16 = vpop.permute.xlu0 %691 }
 0x662   :  { %v694_v17 = vadd.f32 %v692_v16, %v1381_v43 }
 0x664   :  { %1084 = vtanh.f32 %v694_v17 }
 0x671   :  { %v1085_v18 = vpop.eup %1084 }
 0x672   :  { %698 = vrot.lane.b32.xlu1 %v1085_v18, %s1209_s27 }
 0x6e4   :  { %v699_v22 = vpop.permute.xlu1 %698 }
 0x6e5   :  { %v701_v25 = vmul.f32 %v699_v22, %v696_v20 }
 0x6e7   :  { %v1453_v28 = vadd.f32 %v705_v23, %v701_v25 }
 0x6e9   :  { %v823_v29 = vrot.slane %v1453_v28, 2  ;;  %v710_v30 = vrot.slane %v1453_v28, %v709_v26  ;;  %v730_v35 = vrot.slane %v1453_v28, %v729_v32 }
 0x6eb   :  { %717 = vbcast.lane.b32.xlu1 %v710_v30, 296  ;;  %713 = vbcast.lane.b32.xlu0 %v710_v30, 288  ;;  %v1461_v34 = vsel %vm265_vm5, %v832_v33, %v823_v29 }
 0x6ef   :  { %737 = vbcast.lane.b32.xlu1 %v730_v35, 296  ;;  %733 = vbcast.lane.b32.xlu0 %v730_v35, 288 }
 0x6f3   :  { %741 = vbcast.lane.b32.xlu1 %v730_v35, 304  ;;  %721 = vbcast.lane.b32.xlu0 %v710_v30, 304 }
 0x6f7   :  { %745 = vbcast.lane.b32.xlu1 %v730_v35, 312  ;;  %725 = vbcast.lane.b32.xlu0 %v710_v30, 312 }
 0x75d   :  { %v718_v36 = vpop.permute.xlu1 %717  ;;  %v714_v37 = vpop.permute.xlu0 %713 }
 0x75e   :  { %v748_v2 = vmul.f32 %v718_v36, %v1333_v24  ;;  %v747_v38 = vmul.f32 %v714_v37, %v1326_v19  ;;  %v842_v37 = vld [vmem:[%s1532_s8 + $0x18] sm:$0xff] }
 0x75f   :  { %1046 = vmatpush3.msra.mxu1 %v842_v37 }
 0x760   :  { %v756_v45 = vsel %vm412_vm2, %v748_v2, 0.0  ;;  %v755_v46 = vsel %vm412_vm2, %v747_v38, 0.0  ;;  %v841_v2 = vld [vmem:[%s1532_s8 + $0x10] sm:$0xff]  ;;  %1047 = vmatprep.subr.mxu1 %v1205_v1  ;;  %v840_v38 = vld [vmem:[%s1532_s8 + $0x8] sm:$0xff] }
 0x761   :  { %v738_v39 = vpop.permute.xlu1 %737  ;;  %v734_v41 = vpop.permute.xlu0 %733  ;;  %v757_v53 = vadd.f32 %v756_v45, %v755_v46  ;;  %1048 = vmatpush3.msra.mxu1 %v841_v2 }
 0x762   :  { %v752_v42 = vmul.f32 %v738_v39, %v1333_v24  ;;  %v751_v44 = vmul.f32 %v734_v41, %v1326_v19  ;;  %1049 = vmatprep.subr.mxu1 %v1205_v1  ;;  %v817_v41 = vrot.slane %v1453_v28, 6 }
 0x763   :  { %1050 = vmatpush3.msra.mxu1 %v840_v38 }
 0x764   :  { %v769_v48 = vsel %vm412_vm2, %v752_v42, 0.0  ;;  %v768_v49 = vsel %vm412_vm2, %v751_v44, 0.0  ;;  %1051 = vmatprep.subr.mxu1 %v1205_v1 }
 0x765   :  { %v742_v47 = vpop.permute.xlu1 %741  ;;  %v722_v0 = vpop.permute.xlu0 %721  ;;  %v770_v19 = vadd.f32 %v769_v48, %v768_v49  ;;  %v830_v49 = vrot.slane %v1453_v28, 7 }
 0x766   :  { %v753_v50 = vmul.f32 %v742_v47, %v1342_v31  ;;  %v749_v51 = vmul.f32 %v722_v0, %v1342_v31  ;;  %v828_v0 = vrot.slane %v1388_v59, 5 }
 0x768   :  { %v771_v52 = vsel %vm412_vm2, %v753_v50, 0.0  ;;  %v758_v24 = vsel %vm412_vm2, %v749_v51, 0.0 }
 0x769   :  { %v746_v54 = vpop.permute.xlu1 %745  ;;  %v726_v55 = vpop.permute.xlu0 %725  ;;  %v772_v58 = vadd.f32 %v771_v52, %v770_v19  ;;  %v759_v60 = vadd.f32 %v758_v24, %v757_v53 }
 0x76a   :  { %v754_v56 = vmul.f32 %v746_v54, %v1351_v40  ;;  %v750_v57 = vmul.f32 %v726_v55, %v1351_v40 }
 0x76c   :  { %v773_v9 = vsel %vm412_vm2, %v754_v56, 0.0  ;;  %v760_v61 = vsel %vm412_vm2, %v750_v57, 0.0 }
 0x76d   :  { %v774_v63 = vadd.f32 %v773_v9, %v772_v58  ;;  %v761_v31 = vadd.f32 %v760_v61, %v759_v60 }
 0x76f   :  { %v775_v3 = vrot.slane %v774_v63, 4  ;;  %v762_v4 = vrot.slane %v761_v31, 4 }
 0x771   :  { %v776_v7 = vadd.f32 %v775_v3, %v774_v63  ;;  %v763_v6 = vadd.f32 %v762_v4, %v761_v31 }
 0x773   :  { %v777_v8 = vrot.slane %v776_v7, 2  ;;  %v764_v10 = vrot.slane %v763_v6, 2 }
 0x775   :  { %v778_v5 = vadd.f32 %v777_v8, %v776_v7  ;;  %v765_v12 = vadd.f32 %v764_v10, %v763_v6 }
 0x777   :  { %v779_v13 = vrot.slane %v778_v5, 1  ;;  %v766_v14 = vrot.slane %v765_v12, 1 }
 0x779   :  { %v767_v40 = vadd.f32 %v766_v14, %v765_v12  ;;  %v780_v15 = vadd.f32 %v779_v13, %v778_v5 }
 0x77b   :  { %v793_v16 = vadd.f32 %v767_v40, %v1363_v62  ;;  %v794_v17 = vadd.f32 %v780_v15, %v1363_v62  ;;  %v784_v18 = vsel %vm783_vm15, %v780_v15, %v767_v40 }
 0x77c   :  { %v786_v25 = vadd.f32 %v784_v18, %v1381_v43 }
 0x77d   :  { %v797_v20 = vrot.slane %v793_v16, 2  ;;  %v798_v22 = vrot.slane %v794_v17, 1 }
 0x77e   :  { %v970_v26 = vmul.f32 -1.442695, %v786_v25 }
 0x77f   :  { %v799_v23 = vsel %vm783_vm15, %v798_v22, %v797_v20 }
 0x780   :  { %800 = vrot.lane.b32.xlu0 %v799_v23, %s1207_s25  ;;  %1086 = vpow2.f32 %v970_v26 }
 0x78d   :  { %v1087_v27 = vpop.eup %1086 }
 0x78e   :  { %v790_v29 = vadd.f32 1.0, %v1087_v27 }
 0x790   :  { %1088 = vrcp.f32 %v790_v29 }
 0x79d   :  { %v1089_v30 = vpop.eup %1088 }
 0x79e   :  { %v810_v39 = vsub.f32 1.0, %v1089_v30  ;;  %v819_v44 = vmul.f32 %v1089_v30, %v817_v41 }
 0x7f2   :  { %v801_v32 = vpop.permute.xlu0 %800 }
 0x7f3   :  { %v803_v33 = vmul.f32 %v1089_v30, %v801_v32 }
 0x7f5   :  { %805 = vrot.lane.b32.xlu1 %v803_v33, %s1207_s25 }
 0x867   :  { %v806_v35 = vpop.permute.xlu1 %805 }
 0x868   :  { %v808_v62 = vadd.f32 %v806_v35, %v1381_v43  ;;  %v839_v43 = vld [vmem:[%s1532_s8] sm:$0xff]  ;;  %s1210_s8 = smov [#allocation9]  }
 0x869   :  { %1052 = vmatpush3.msra.mxu1 %v839_v43  ;;  %s949_s14 = sshll.u32 %s1210_s8, 4  ;;  %s950_s14 = int_to_ptr.vmem [resolvable:$true] %s949_s14 }
 0x86a   :  { %1090 = vtanh.f32 %v808_v62  ;;  %s1152_s15 = scalar_lea.vmem %s950_s14, 32  ;;  %p1157_p2 = scmp.lt.s32.totalorder %s950_s14, %s950_s14 }
 0x86b   :  { %p1153_p1 = scmp.ne.s32.totalorder %s950_s14, %s1152_s15  ;;  %p1158_p3 = scmp.lt.s32.totalorder %s1152_s15, %s1152_s15 }
 0x86d   :  { %p1159_p4 = por %p1158_p3, %p1157_p2 }
 0x86f   :  { %p1160_p5 = pnand %p1159_p4, %p1153_p1 }
 0x877   :  { %v1091_v36 = vpop.eup %1090 }
 0x878   :  { %812 = vrot.lane.b32.xlu0 %v1091_v36, %s1209_s27 }
 0x8ea   :  { %v813_v42 = vpop.permute.xlu0 %812 }
 0x8eb   :  { %v815_v45 = vmul.f32 %v813_v42, %v810_v39 }
 0x8ed   :  { %v820_v46 = vadd.f32 %v819_v44, %v815_v45 }
 0x8ef   :  { %v826_v47 = vrot.slane %v820_v46, 3  ;;  %928 = vrot.lane.b32.xlu0 %v820_v46, %s1209_s27 }
 0x8f1   :  { %v834_v48 = vsel %vm267_vm6, %v1461_v34, %v826_v47 }
 0x8f2   :  { %v835_v1 = vsel %vm269_vm7, %v834_v48, %v828_v0 }
 0x8f3   :  { %v836_v50 = vsel %vm271_vm8, %v835_v1, %v703_v21 }
 0x8f4   :  { %v837_v51 = vsel %vm273_vm9, %v836_v50, %v830_v49 }
 0x8f5   :  { %v838_v52 = vsel %vm275_vm10, %v837_v51, %v820_v46 }
 0x8f6   :  { %851 = vrot.lane.b32.xlu1 %v838_v52, %s1209_s27 }
 0x961   :  { %v929_v24 = vpop.permute.xlu0 %928 }
 0x962   :  { %932 = vst.msk [vmem:[#allocation9 - $0x6] sm:$0xc0] %vm931_vm0, %v929_v24 }
 0x968   :  { %v852_v59 = vpop.permute.xlu1 %851 }
 0x969   :  { %1054 = vmatmul.mubr.msk.f32.vlgmr.msra.gmra.mxu1 %vm853_vm1, %v852_v59 }
 0x96a   :  { %1163 = shalt.err (!%p1160_p5)
}
 0x96b   :  { %952 = dma.vmem_to_hbm [thread:$0]  %s950_s14, 32, %s1535_s11, [#allocation10]   ;;  %v971_v11 = vld [vmem:[%s1533_s9] ss:$0 sm:$0xff]  ;;  %vm926_vm2 = vcmask 64512  }
 0x96c   :  { %s1211_s3 = smov [#allocation8]  }
 0x96d   :  { %s939_s19 = sshll.u32 %s1211_s3, 4  ;;  %s940_s19 = int_to_ptr.vmem [resolvable:$true] %s939_s19 }
 0x96e   :  { %s1172_s20 = scalar_lea.vmem %s940_s19, 128  ;;  %p1177_p7 = scmp.lt.s32.totalorder %s940_s19, %s940_s19 }
 0x96f   :  { %p1173_p6 = scmp.ne.s32.totalorder %s940_s19, %s1172_s20  ;;  %p1178_p8 = scmp.lt.s32.totalorder %s1172_s20, %s1172_s20 }
 0x971   :  { %p1179_p9 = por %p1178_p8, %p1177_p7 }
 0x973   :  { %p1180_p10 = pnand %p1179_p9, %p1173_p6 }
 0xa29   :  { %v922_v21 = vpop.f32.mrf.mxu1 }
 0xa2a   :  { %v923_v28 = vadd.f32 %v971_v11, %v922_v21 }
 0xa2b   :  { %v1055_v34 = vpop.f32.mrf.mxu1 }
 0xa2c   :  { %927 = vst.msk [vmem:[#allocation8] sm:$0xff] %vm926_vm2, %v923_v28 }
 0xa2d   :  { %1183 = shalt.err (!%p1180_p10)
}
 0xa2e   :  { %942 = dma.vmem_to_hbm [thread:$0]  %s940_s19, 128, %s1534_s10, [#allocation4]  }
 0xa2f   :  { %1196 = dma.done.wait [#allocation4], 128  }
 0xa30   :  { %1197 = vsyncadd [#allocation4], 4294967168 }
 0xa31   :  { %1198 = dma.done.wait [#allocation10], 32  }
 0xa32   :  { %1199 = vsyncadd [#allocation10], 4294967264 }
 0xa33   :  { %959 = vsyncpa [#allocation3], 1 }
 0xa34   :  { %960 = vsyncpa [#allocation6], 1 }
 0xa35   :  { %961 = vsyncpa [#allocation4], 1 }
 0xa36   :  { %962 = vsyncpa [#allocation10], 1 }

</bundles_post_ra>
